<compile_context>
chip_gen: v5e
topology: v5e:2x2
jax: 0.10.0
libtpu: 0.0.40
codegen_flags: <defaults>
</compile_context>

<pallas_src>
import functools

import numpy as np

import jax
import jax.numpy as jnp
from jax.experimental import pallas as pl
from jax.experimental.pallas import tpu as pltpu


def _round_up(x, m):
    return ((x + m - 1) // m) * m


def _vmem_bytes_per_batch_element(p_pad, npad):
    """Approximate per-step VMEM bytes attributable to one batch element."""
    # points(+mask) block: (p_pad, D+1) f32 rows, lane-padded to one (8,128)
    # tile per 8 rows -> 512 B/row, double-buffered by the pipeline.
    pts = p_pad * 512 * 2
    # live f32 intermediates acc/x/temps of shape (p_pad, npad): budget ~3 copies
    inter = p_pad * npad * 4 * 3
    # output row, double-buffered
    out = npad * 4 * 2
    return pts + inter + out


def _static_int_exponent(exponent, static_exponent):
    """Return small positive int k if |exponent| is statically known to equal
    k for every structure element, else None.  Prefer passing
    `static_exponent` explicitly from the module config (e.g. 1.0 for the
    default frozen exponent); the numpy fallback only works on concrete
    (non-traced) arrays and silently falls back to the general path under jit.
    """
    if static_exponent is not None:
        v = abs(float(static_exponent))
        if v == int(v) and 1 <= int(v) <= 4:
            return int(v)
        return None
    try:
        e = np.abs(np.asarray(exponent, dtype=np.float64))
        if e.size > 0 and np.all(e == e.flat[0]):
            v = float(e.flat[0])
            if v == int(v) and 1 <= int(v) <= 4:
                return int(v)
    except Exception:
        pass  # traced under jit etc. -> general exp/log path
    return None


def slayer_rational_kernel(pts_ref, c_ref, s_ref, e_ref, out_ref, *,
                           p_pad, exponent_int, threshold):
    # pts_ref : (TBP, D+1)  point coords in cols [0:D], not_dummy mask in col D
    # c_ref   : (D, Npad)   centers^T                 (grid invariant)
    # s_ref   : (D, Npad)   |sharpness|^T             (grid invariant)
    # e_ref   : (1, Npad)   |exponent|                (grid invariant)
    # out_ref : (TB, Npad)
    pts = pts_ref[...].astype(jnp.float32)          # (TBP, D+1)
    tbp = pts.shape[0]
    d_dim = c_ref.shape[0]
    npad = c_ref.shape[1]
    tb = tbp // p_pad

    # acc[r, n] = sum_d |p[r,d] - c[n,d]| * |s[n,d]|   (D tiny & static)
    acc = jnp.zeros((tbp, npad), jnp.float32)
    for d in range(d_dim):
        acc = acc + jnp.abs(pts[:, d:d + 1] - c_ref[d:d + 1, :]) * s_ref[d:d + 1, :]

    one_plus = 1.0 + acc
    if exponent_int is not None:
        # |exponent| statically known to be a small integer: EUP approximate
        # reciprocal (free slot) + one Newton step to f32 accuracy, then
        # integer power by repeated multiplication.  No divide / pow / log.
        r = pl.reciprocal(one_plus, approx=True)
        r = r * (2.0 - one_plus * r)                # Newton refinement
        x = r
        for _ in range(exponent_int - 1):
            x = x * r
    else:
        # General exponent: one log + one exp on the EUP.
        x = jnp.exp(-e_ref[...] * jnp.log(one_plus))

    if threshold is not None:
        x = jnp.where(x < threshold, 0.0, x)

    # Mask dummy/padded points, then reduce over the point axis via a
    # sublane-group sum (reshape is layout-free since p_pad % 8 == 0).
    x = x * pts[:, d_dim:d_dim + 1]
    out_ref[...] = jnp.sum(x.reshape(tb, p_pad, npad), axis=1).astype(out_ref.dtype)


def slayer_rational(batch, not_dummy, centers, sharpness, exponent,
                    pointwise_activation_threshold=None,
                    tb=None,
                    points_dtype=jnp.float32,
                    static_exponent=None,
                    vmem_budget_bytes=None):
    """batch: (B, P, D); not_dummy: (B, P); centers: (N, D);
    sharpness: (N, D) / (1, D) / (1,); exponent: (N,) or (1,).
    Returns (B, N) float32.

    static_exponent: pass the statically known common value of |exponent|
    (e.g. 1.0 for torchph's default frozen exponent) to enable the
    reciprocal fast path under jit without any device sync."""
    B, P, D = batch.shape
    N = centers.shape[0]

    # ---- grid-invariant parameter prep (abs hoisted out of the kernel) ----
    centers_f = jnp.asarray(centers, jnp.float32)
    sharp_full = jnp.abs(jnp.broadcast_to(
        jnp.asarray(sharpness, jnp.float32), (N, D)))
    exp_full = jnp.abs(jnp.broadcast_to(
        jnp.asarray(exponent, jnp.float32), (N,)))
    exponent_int = _static_int_exponent(exponent, static_exponent)

    # ---- lane-dense padding of the structure-element axis ----
    Npad = _round_up(N, 128)
    c_t = centers_f.T                                # (D, N)
    s_t = sharp_full.T                               # (D, N)
    e_row = exp_full.reshape(1, N)
    if Npad != N:
        c_t = jnp.pad(c_t, ((0, 0), (0, Npad - N)))
        s_t = jnp.pad(s_t, ((0, 0), (0, Npad - N)))
        e_row = jnp.pad(e_row, ((0, 0), (0, Npad - N)), constant_values=1.0)

    # ---- point-axis padding (sublane-aligned groups for the in-kernel sum) --
    Ppad = _round_up(max(P, 1), 8)

    # ---- VMEM-budget-driven batch tiling ----
    try:
        _cap = int(pltpu.get_tpu_info().vmem_capacity_bytes)
    except Exception:
        _cap = 64 * 1024 * 1024                      # v7x-safe fallback
    if vmem_budget_bytes is None:
        vmem_budget_bytes = int(_cap * 0.6)

    per_b = _vmem_bytes_per_batch_element(Ppad, Npad)
    if tb is None:
        TB = max(8, (int(vmem_budget_bytes // max(per_b, 1)) // 8) * 8)
        TB = min(TB, _round_up(B, 8))
        # keep >= 2 grid steps when B allows, so both v7x TensorCores get work
        if _round_up(B, 8) > 8 and _round_up(B, TB) // TB < 2:
            TB = max(8, _round_up((B + 1) // 2, 8))
    else:
        TB = max(8, _round_up(int(tb), 8))
    B_pad = _round_up(B, TB)
    G = B_pad // TB
    TBP = TB * Ppad

    # Footprint-derived scoped-VMEM limit (capped at physical capacity).
    footprint = (TB * per_b
                 + 4 * (D + 1) * Npad * 4 * 2        # resident invariants (x2 bufs)
                 + (2 << 20))                        # compiler slack
    vmem_limit = int(min(max(footprint, 16 * 1024 * 1024), _cap))

    # ---- build the (points, mask) block: mask folded in as an extra column --
    pts_aug = jnp.concatenate(
        [batch.astype(jnp.float32), not_dummy.astype(jnp.float32)[:, :, None]],
        axis=-1)                                     # (B, P, D+1)
    if Ppad != P:
        pts_aug = jnp.pad(pts_aug, ((0, 0), (0, Ppad - P), (0, 0)))
    if B_pad != B:
        pts_aug = jnp.pad(pts_aug, ((0, B_pad - B), (0, 0), (0, 0)))
    pts_flat = pts_aug.astype(points_dtype).reshape(B_pad * Ppad, D + 1)

    kernel = functools.partial(
        slayer_rational_kernel,
        p_pad=Ppad,
        exponent_int=exponent_int,
        threshold=(float(pointwise_activation_threshold)
                   if pointwise_activation_threshold is not None else None),
    )

    out = pl.pallas_call(
        kernel,
        out_shape=jax.ShapeDtypeStruct((B_pad, Npad), jnp.float32),
        grid=(G,),
        in_specs=[
            pl.BlockSpec((TBP, D + 1), lambda g: (g, 0)),   # points + mask col
            pl.BlockSpec((D, Npad), lambda g: (0, 0)),      # centers^T
            pl.BlockSpec((D, Npad), lambda g: (0, 0)),      # |sharpness|^T
            pl.BlockSpec((1, Npad), lambda g: (0, 0)),      # |exponent|
        ],
        out_specs=pl.BlockSpec((TB, Npad), lambda g: (g, 0)),
        compiler_params=pltpu.CompilerParams(
            dimension_semantics=("parallel",),
            vmem_limit_bytes=vmem_limit,
        ),
    )(pts_flat, c_t, s_t, e_row)

    return out[:B, :N]


def slayer_rational_ref(batch, not_dummy, centers, sharpness, exponent,
                        threshold=None):
    """Pure-JAX reference mirroring the PyTorch forward exactly."""
    N, D = centers.shape
    sharp = jnp.broadcast_to(jnp.asarray(sharpness, jnp.float32), (N, D))
    expo = jnp.broadcast_to(jnp.asarray(exponent, jnp.float32), (N,))
    x = jnp.abs(centers[None, :, None, :] - batch[:, None, :, :])  # (B,N,P,D)
    x = x * jnp.abs(sharp)[None, :, None, :]
    x = jnp.sum(x, axis=3)                                         # (B,N,P)
    x = 1.0 / jnp.power(1.0 + x, jnp.abs(expo)[None, :, None])
    if threshold is not None:
        x = jnp.where(x < threshold, 0.0, x)
    x = x * not_dummy[:, None, :]
    return jnp.sum(x, axis=2)                                      # (B,N)


if __name__ == "__main__":
    # Module config: n_elements=32, point_dimension=2
    B, P, D, N = 2, 8, 2, 32

    key = jax.random.PRNGKey(0)
    k_pts, k_c, k_s = jax.random.split(key, 3)

    # "prepared batch" (as prepare_batch would produce): points + dummy mask.
    batch = jax.random.uniform(k_pts, (B, P, D), dtype=jnp.float32)
    not_dummy = jnp.stack([
        jnp.concatenate([jnp.ones((6,)), jnp.zeros((P - 6,))]),  # 6 real points
        jnp.ones((P,)),                                          # 8 real points
    ]).astype(jnp.float32)
    batch = batch * not_dummy[:, :, None]  # zero dummy rows like prepare_batch

    # Parameter init matching torchph defaults / shapes:
    centers = jax.random.uniform(k_c, (N, D), dtype=jnp.float32)   # torch.rand
    sharpness = 1.0 + 0.5 * jax.random.uniform(k_s, (N, D), dtype=jnp.float32)

    # 1) default frozen all-ones exponent -> static reciprocal fast path.
    exponent1 = jnp.ones((N,), dtype=jnp.float32)                  # torch.ones
    out1 = jax.block_until_ready(
        slayer_rational(batch, not_dummy, centers, sharpness, exponent1,
                        static_exponent=1.0))
    ref1 = slayer_rational_ref(batch, not_dummy, centers, sharpness, exponent1)
    assert out1.shape == (B, N)
    assert jnp.allclose(out1, ref1, atol=3e-5, rtol=3e-5), "mismatch (exp=1)"

    # 2) small-integer exponent -> squared-reciprocal path (no log/exp).
    exponent2 = 2.0 * jnp.ones((N,), dtype=jnp.float32)
    out2 = jax.block_until_ready(
        slayer_rational(batch, not_dummy, centers, sharpness, exponent2,
                        static_exponent=2.0))
    ref2 = slayer_rational_ref(batch, not_dummy, centers, sharpness, exponent2)
    assert jnp.allclose(out2, ref2, atol=3e-5, rtol=3e-5), "mismatch (exp=2)"

    # 3) general fractional exponent (exp/log path) with pointwise threshold.
    exponent3 = 1.5 * jnp.ones((N,), dtype=jnp.float32)
    out3 = jax.block_until_ready(
        slayer_rational(batch, not_dummy, centers, sharpness, exponent3,
                        pointwise_activation_threshold=0.05))
    ref3 = slayer_rational_ref(batch, not_dummy, centers, sharpness, exponent3,
                               threshold=0.05)
    assert jnp.allclose(out3, ref3, atol=2e-4, rtol=2e-4), "mismatch (general)"

    print("KERNEL_OK")
</pallas_src>

<mosaic_0001>
module attributes {stable_mosaic.version = 11 : i64} {
  func.func @slayer_rational_kernel(%arg0: i32, %arg1: memref<64x3xf32, #tpu.memory_space<vmem>>, %arg2: memref<2x128xf32, #tpu.memory_space<vmem>>, %arg3: memref<2x128xf32, #tpu.memory_space<vmem>>, %arg4: memref<1x128xf32, #tpu.memory_space<vmem>>, %arg5: memref<8x128xf32, #tpu.memory_space<vmem>>) attributes {dimension_semantics = [#tpu.dimension_semantics<parallel>], iteration_bounds = array<i64: 1>, scalar_prefetch = 0 : i64, scratch_operands = 0 : i64, tpu.core_type = #tpu.core_type<tc>, window_params = [{transform_indices = @transform_0, window_bounds = array<i64: 64, 3>}, {pipeline_mode = #tpu.pipeline_mode<synchronous>, transform_indices = @transform_1, window_bounds = array<i64: 2, 128>}, {pipeline_mode = #tpu.pipeline_mode<synchronous>, transform_indices = @transform_2, window_bounds = array<i64: 2, 128>}, {pipeline_mode = #tpu.pipeline_mode<synchronous>, transform_indices = @transform_3, window_bounds = array<i64: 1, 128>}, {transform_indices = @transform_4, window_bounds = array<i64: 8, 128>}]} {
    %c0 = arith.constant 0 : index
    %c0_0 = arith.constant 0 : index
    %0 = vector.load %arg1[%c0, %c0_0] : memref<64x3xf32, #tpu.memory_space<vmem>>, vector<64x3xf32>
    %cst = arith.constant 0.000000e+00 : f32
    %1 = vector.broadcast %cst : f32 to vector<64x128xf32>
    %2 = vector.extract_strided_slice %0 {offsets = [0, 0], sizes = [64, 1], strides = [1, 1]} : vector<64x3xf32> to vector<64x1xf32>
    %c0_1 = arith.constant 0 : index
    %c0_2 = arith.constant 0 : index
    %3 = vector.load %arg2[%c0_1, %c0_2] : memref<2x128xf32, #tpu.memory_space<vmem>>, vector<1x128xf32>
    %4 = vector.broadcast %2 : vector<64x1xf32> to vector<64x128xf32>
    %5 = vector.broadcast %3 : vector<1x128xf32> to vector<64x128xf32>
    %6 = arith.subf %4, %5 : vector<64x128xf32>
    %7 = math.absf %6 : vector<64x128xf32>
    %c0_3 = arith.constant 0 : index
    %c0_4 = arith.constant 0 : index
    %8 = vector.load %arg3[%c0_3, %c0_4] : memref<2x128xf32, #tpu.memory_space<vmem>>, vector<1x128xf32>
    %9 = vector.broadcast %8 : vector<1x128xf32> to vector<64x128xf32>
    %10 = arith.mulf %7, %9 : vector<64x128xf32>
    %11 = arith.addf %1, %10 : vector<64x128xf32>
    %12 = vector.extract_strided_slice %0 {offsets = [0, 1], sizes = [64, 1], strides = [1, 1]} : vector<64x3xf32> to vector<64x1xf32>
    %c1 = arith.constant 1 : index
    %c0_5 = arith.constant 0 : index
    %13 = vector.load %arg2[%c1, %c0_5] : memref<2x128xf32, #tpu.memory_space<vmem>>, vector<1x128xf32>
    %14 = vector.broadcast %12 : vector<64x1xf32> to vector<64x128xf32>
    %15 = vector.broadcast %13 : vector<1x128xf32> to vector<64x128xf32>
    %16 = arith.subf %14, %15 : vector<64x128xf32>
    %17 = math.absf %16 : vector<64x128xf32>
    %c1_6 = arith.constant 1 : index
    %c0_7 = arith.constant 0 : index
    %18 = vector.load %arg3[%c1_6, %c0_7] : memref<2x128xf32, #tpu.memory_space<vmem>>, vector<1x128xf32>
    %19 = vector.broadcast %18 : vector<1x128xf32> to vector<64x128xf32>
    %20 = arith.mulf %17, %19 : vector<64x128xf32>
    %21 = arith.addf %11, %20 : vector<64x128xf32>
    %cst_8 = arith.constant 1.000000e+00 : f32
    %22 = vector.broadcast %cst_8 : f32 to vector<64x128xf32>
    %23 = arith.addf %22, %21 : vector<64x128xf32>
    %24 = tpu.reciprocal %23 {approx = true} : vector<64x128xf32> -> vector<64x128xf32>
    %25 = arith.mulf %23, %24 : vector<64x128xf32>
    %cst_9 = arith.constant 2.000000e+00 : f32
    %26 = vector.broadcast %cst_9 : f32 to vector<64x128xf32>
    %27 = arith.subf %26, %25 : vector<64x128xf32>
    %28 = arith.mulf %24, %27 : vector<64x128xf32>
    %29 = vector.extract_strided_slice %0 {offsets = [0, 2], sizes = [64, 1], strides = [1, 1]} : vector<64x3xf32> to vector<64x1xf32>
    %30 = vector.broadcast %29 : vector<64x1xf32> to vector<64x128xf32>
    %31 = arith.mulf %28, %30 : vector<64x128xf32>
    %32 = vector.shape_cast %31 : vector<64x128xf32> to vector<8x8x128xf32>
    %cst_10 = arith.constant dense<0.000000e+00> : vector<8x128xf32>
    %33 = vector.multi_reduction <add>, %32, %cst_10 [1] : vector<8x8x128xf32> to vector<8x128xf32>
    %c0_11 = arith.constant 0 : index
    %c0_12 = arith.constant 0 : index
    %34 = vector.load %arg5[%c0_11, %c0_12] : memref<8x128xf32, #tpu.memory_space<vmem>>, vector<8x128xf32>
    tpu.vector_store %arg5[%c0_11, %c0_12], %33 {strides = array<i32>} : memref<8x128xf32, #tpu.memory_space<vmem>>, vector<8x128xf32>,
    return
  }
  func.func @transform_0(%arg0: i32) -> (i32, i32) {
    %c0_i32 = arith.constant 0 : i32
    %c0_i32_0 = arith.constant 0 : i32
    return %arg0, %c0_i32 : i32, i32
  }
  func.func @transform_1(%arg0: i32) -> (i32, i32) {
    %c0_i32 = arith.constant 0 : i32
    %c0_i32_0 = arith.constant 0 : i32
    %c0_i32_1 = arith.constant 0 : i32
    return %c0_i32, %c0_i32_0 : i32, i32
  }
  func.func @transform_2(%arg0: i32) -> (i32, i32) {
    %c0_i32 = arith.constant 0 : i32
    %c0_i32_0 = arith.constant 0 : i32
    %c0_i32_1 = arith.constant 0 : i32
    return %c0_i32, %c0_i32_0 : i32, i32
  }
  func.func @transform_3(%arg0: i32) -> (i32, i32) {
    %c0_i32 = arith.constant 0 : i32
    %c0_i32_0 = arith.constant 0 : i32
    %c0_i32_1 = arith.constant 0 : i32
    return %c0_i32, %c0_i32_0 : i32, i32
  }
  func.func @transform_4(%arg0: i32) -> (i32, i32) {
    %c0_i32 = arith.constant 0 : i32
    %c0_i32_0 = arith.constant 0 : i32
    return %arg0, %c0_i32 : i32, i32
  }
}

</mosaic_0001>

<bundles_post_ra>
// kernel: tpu_custom_call.1
= control target key start
LH: loop header
LB: loop body
LE: loop exit
PB: predicated region body
PF: predicated region fallthrough
CT: control target
= control target key end

     0   :  { %v397_v3 = vmov 0   ;;  %s511_s0 = inlined_call_operand.vmem [shape: f32[64,3], index: 0, kind: input, shape index: {}]   ;;  %s512_s1 = inlined_call_operand.vmem [shape: f32[2,128], index: 1, kind: input, shape index: {}]   ;;  %s513_s2 = inlined_call_operand.vmem [shape: f32[2,128], index: 2, kind: input, shape index: {}]   ;;  %s514_s3 = inlined_call_operand.vmem [shape: f32[1,128], index: 3, kind: input, shape index: {}]   ;;  %s515_s4 = inlined_call_operand.hbm [shape: f32[8,128], index: 4, kind: output, shape index: {}]  }
   0x1   :  { %v22_v0 = vld [vmem:[%s511_s0 + $0x20] sm:$0xff]  ;;  %v20_v1 = vld [vmem:[%s511_s0 + $0x10] sm:$0xff]  ;;  %344 = vset.pattern.permute.xlu2 %v397_v3  ;;  %343 = vset.pattern.permute.xlu1 %v397_v3 }
   0x2   :  { %v18_v2 = vld [vmem:[%s511_s0] sm:$0xff]  ;;  %342 = vset.pattern.permute.xlu0 %v397_v3  ;;  %49 = vperm.xlu2 %344, %v22_v0  }
   0x3   :  { %39 = vperm.xlu1 %343, %v20_v1   ;;  %29 = vperm.xlu0 %342, %v18_v2  }
   0x4   :  { %9 = vsyncpa [#allocation3], 0  ;;  %v23_v4 = vld [vmem:[%s511_s0 + $0x28] sm:$0xff]  ;;  %v21_v5 = vld [vmem:[%s511_s0 + $0x18] sm:$0xff]  ;;  %v398_v9 = vmov 1   ;;  %v399_v10 = vmov 2  }
   0x5   :  { %v19_v6 = vld [vmem:[%s511_s0 + $0x8] sm:$0xff]  ;;  %v25_v7 = vld [vmem:[%s511_s0 + $0x38] sm:$0xff]  ;;  %v24_v8 = vld [vmem:[%s511_s0 + $0x30] sm:$0xff]  ;;  %vm306_vm0 = vcmask 1041409   ;;  %vm308_vm1 = vcmask 1042434   ;;  %vm310_vm2 = vcmask 1043459  }
   0x6   :  { %v455_v14 = vld [vmem:[%s512_s1 + $0x1] ss:$0 sm:$0xff]  ;;  %v460_v15 = vld [vmem:[%s512_s1] ss:$0 sm:$0xff]  ;;  %vm312_vm3 = vcmask 1044484   ;;  %vm314_vm4 = vcmask 1045509  }
   0x7   :  { %v467_v21 = vld [vmem:[%s513_s2] ss:$0 sm:$0xff]  ;;  %v472_v22 = vld [vmem:[%s513_s2 + $0x1] ss:$0 sm:$0xff]  ;;  %vm316_vm5 = vcmask 1046534   ;;  %s400_s1 = smov [#allocation2]  }
   0x8   :  { %s327_s2 = sshll.u32 %s400_s1, 4  ;;  %s329_s13 = sshll.u32 %s515_s4, 4  ;;  %vm318_vm6 = vcmask 1047559   ;;  %s328_s2 = int_to_ptr.vmem [resolvable:$true] %s327_s2  ;;  %s330_s13 = int_to_ptr.hbm [resolvable:$true] %s329_s13 }
   0xa   :  { %54 = vperm.xlu2 %344, %v23_v4  }
   0xb   :  { %44 = vperm.xlu1 %343, %v21_v5   ;;  %34 = vperm.xlu0 %342, %v19_v6  }
  0x12   :  { %345 = vset.pattern.permute.xlu2 %v398_v9 }
  0x13   :  { %64 = vperm.xlu1 %343, %v25_v7   ;;  %59 = vperm.xlu0 %342, %v24_v8  }
  0x14   :  { %104 = vperm.xlu2 %345, %v18_v2  }
  0x1b   :  { %347 = vset.pattern.permute.xlu1 %v398_v9  ;;  %346 = vset.pattern.permute.xlu0 %v398_v9 }
  0x1c   :  { %112 = vperm.xlu1 %347, %v20_v1   ;;  %116 = vperm.xlu2 %345, %v21_v5  }
  0x1d   :  { %108 = vperm.xlu0 %346, %v19_v6  }
  0x24   :  { %120 = vperm.xlu1 %347, %v22_v0   ;;  %124 = vperm.xlu2 %345, %v23_v4  }
  0x25   :  { %128 = vperm.xlu0 %346, %v24_v8  }
  0x2c   :  { %132 = vperm.xlu1 %347, %v25_v7   ;;  %348 = vset.pattern.permute.xlu2 %v399_v10 }
  0x2d   :  { %211 = vperm.xlu2 %348, %v18_v2   ;;  %349 = vset.pattern.permute.xlu0 %v399_v10 }
  0x2e   :  { %215 = vperm.xlu0 %349, %v19_v6  }
  0x34   :  { %350 = vset.pattern.permute.xlu1 %v399_v10 }
  0x35   :  { %219 = vperm.xlu1 %350, %v20_v1   ;;  %223 = vperm.xlu2 %348, %v21_v5  }
  0x36   :  { %235 = vperm.xlu0 %349, %v24_v8  }
  0x3d   :  { %227 = vperm.xlu1 %350, %v22_v0   ;;  %231 = vperm.xlu2 %348, %v23_v4  }
  0x45   :  { %239 = vperm.xlu1 %350, %v25_v7  }
  0x5c   :  { %v450_v11 = vpop.permute.xlu2 %49 }
  0x5d   :  { %v72_v63 = vsub.f32 %v450_v11, %v460_v15 }
  0x5f   :  { %v80_v10 = vand.u32 2147483647, %v72_v63 }
  0x64   :  { %v55_v12 = vpop.permute.xlu2 %54 }
  0x65   :  { %v73_v38 = vsub.f32 %v55_v12, %v460_v15 }
  0x67   :  { %v81_v44 = vand.u32 2147483647, %v73_v38 }
  0x69   :  { %v91_v47 = vmul.f32 %v467_v21, %v81_v44 }
  0x6e   :  { %v105_v13 = vpop.permute.xlu2 %104 }
  0x6f   :  { %v136_v16 = vsub.f32 %v105_v13, %v455_v14 }
  0x71   :  { %v144_v23 = vand.u32 2147483647, %v136_v16 }
  0x73   :  { %v154_v26 = vmul.f32 %v472_v22, %v144_v23 }
  0x75   :  { %v40_v17 = vpop.permute.xlu1 %39  ;;  %v30_v18 = vpop.permute.xlu0 %29 }
  0x76   :  { %v68_v19 = vsub.f32 %v30_v18, %v460_v15  ;;  %v117_v20 = vpop.permute.xlu2 %116  ;;  %v70_v48 = vsub.f32 %v40_v17, %v460_v15 }
  0x77   :  { %v139_v25 = vsub.f32 %v117_v20, %v455_v14 }
  0x78   :  { %v76_v24 = vand.u32 2147483647, %v68_v19  ;;  %v78_v53 = vand.u32 2147483647, %v70_v48 }
  0x79   :  { %v147_v30 = vand.u32 2147483647, %v139_v25 }
  0x7a   :  { %v86_v27 = vmul.f32 %v467_v21, %v76_v24  ;;  %v88_v0 = vmul.f32 %v467_v21, %v78_v53 }
  0x7b   :  { %v157_v36 = vmul.f32 %v472_v22, %v147_v30 }
  0x7c   :  { %v162_v34 = vadd.f32 %v154_v26, %v86_v27  ;;  %v90_v26 = vmul.f32 %v467_v21, %v80_v10 }
  0x7d   :  { %v45_v28 = vpop.permute.xlu1 %44  ;;  %v35_v29 = vpop.permute.xlu0 %34 }
  0x7e   :  { %v71_v31 = vsub.f32 %v45_v28, %v460_v15  ;;  %v125_v32 = vpop.permute.xlu2 %124  ;;  %v170_v39 = vadd.f32 1.0, %v162_v34  ;;  %v69_v49 = vsub.f32 %v35_v29, %v460_v15 }
  0x7f   :  { %v141_v35 = vsub.f32 %v125_v32, %v455_v14 }
  0x80   :  { %v79_v33 = vand.u32 2147483647, %v71_v31  ;;  %355 = vrcp.f32 %v170_v39  ;;  %v77_v56 = vand.u32 2147483647, %v69_v49 }
  0x81   :  { %v149_v40 = vand.u32 2147483647, %v141_v35 }
  0x82   :  { %v89_v37 = vmul.f32 %v467_v21, %v79_v33  ;;  %v87_v3 = vmul.f32 %v467_v21, %v77_v56 }
  0x83   :  { %v159_v45 = vmul.f32 %v472_v22, %v149_v40 }
  0x84   :  { %v165_v43 = vadd.f32 %v157_v36, %v89_v37 }
  0x85   :  { %v482_v41 = vpop.permute.xlu1 %64  ;;  %v60_v42 = vpop.permute.xlu0 %59  ;;  %v167_v50 = vadd.f32 %v159_v45, %v91_v47 }
  0x86   :  { %v173_v46 = vadd.f32 1.0, %v165_v43  ;;  %v356_v52 = vpop.eup %355  ;;  %v74_v4 = vsub.f32 %v60_v42, %v460_v15  ;;  %v75_v27 = vsub.f32 %v482_v41, %v460_v15 }
  0x87   :  { %v175_v58 = vadd.f32 1.0, %v167_v50  ;;  %v212_v59 = vpop.permute.xlu2 %211  ;;  %v186_v61 = vmul.f32 %v356_v52, %v170_v39 }
  0x88   :  { %357 = vrcp.f32 %v173_v46  ;;  %v82_v17 = vand.u32 2147483647, %v74_v4  ;;  %v83_v39 = vand.u32 2147483647, %v75_v27 }
  0x89   :  { %359 = vrcp.f32 %v175_v58  ;;  %v194_v7 = vsub.f32 2.0, %v186_v61 }
  0x8a   :  { %v92_v31 = vmul.f32 %v467_v21, %v82_v17 }
  0x8b   :  { %v202_v23 = vmul.f32 %v356_v52, %v194_v7 }
  0x8d   :  { %v242_v34 = vmul.f32 %v212_v59, %v202_v23 }
  0x8e   :  { %v113_v51 = vpop.permute.xlu1 %112  ;;  %v358_v2 = vpop.eup %357 }
  0x8f   :  { %v138_v54 = vsub.f32 %v113_v51, %v455_v14  ;;  %v109_v55 = vpop.permute.xlu0 %108  ;;  %v189_v13 = vmul.f32 %v358_v2, %v173_v46  ;;  %v360_v25 = vpop.eup %359  ;;  %v250_v47 = vrot.slane %v242_v34, 4  ;;  %v93_v51 = vmul.f32 %v467_v21, %v83_v39 }
  0x90   :  { %v137_v57 = vsub.f32 %v109_v55, %v455_v14  ;;  %v224_v29 = vpop.permute.xlu2 %223  ;;  %v191_v36 = vmul.f32 %v360_v25, %v175_v58 }
  0x91   :  { %v146_v60 = vand.u32 2147483647, %v138_v54  ;;  %v197_v28 = vsub.f32 2.0, %v189_v13 }
  0x92   :  { %v145_v62 = vand.u32 2147483647, %v137_v57  ;;  %v199_v48 = vsub.f32 2.0, %v191_v36  ;;  %v251_v57 = vadd.f32 %v250_v47, %v242_v34 }
  0x93   :  { %v156_v1 = vmul.f32 %v472_v22, %v146_v60  ;;  %v205_v40 = vmul.f32 %v358_v2, %v197_v28 }
  0x94   :  { %v155_v5 = vmul.f32 %v472_v22, %v145_v62  ;;  %v207_v58 = vmul.f32 %v360_v25, %v199_v48 }
  0x95   :  { %v164_v6 = vadd.f32 %v156_v1, %v88_v0  ;;  %v245_v52 = vmul.f32 %v224_v29, %v205_v40 }
  0x96   :  { %v163_v8 = vadd.f32 %v155_v5, %v87_v3  ;;  %v121_v9 = vpop.permute.xlu1 %120 }
  0x97   :  { %v172_v12 = vadd.f32 1.0, %v164_v6  ;;  %v140_v11 = vsub.f32 %v121_v9, %v455_v14  ;;  %v129_v16 = vpop.permute.xlu0 %128  ;;  %v268_v61 = vrot.slane %v245_v52, 4 }
  0x98   :  { %v171_v18 = vadd.f32 1.0, %v163_v8  ;;  %v142_v19 = vsub.f32 %v129_v16, %v455_v14  ;;  %v232_v55 = vpop.permute.xlu2 %231 }
  0x99   :  { %361 = vrcp.f32 %v172_v12  ;;  %v148_v20 = vand.u32 2147483647, %v140_v11  ;;  %v247_v2 = vmul.f32 %v232_v55, %v207_v58  ;;  %v269_v8 = vadd.f32 %v268_v61, %v245_v52 }
  0x9a   :  { %363 = vrcp.f32 %v171_v18  ;;  %v150_v24 = vand.u32 2147483647, %v142_v19 }
  0x9b   :  { %v158_v30 = vmul.f32 %v472_v22, %v148_v20 }
  0x9c   :  { %v160_v32 = vmul.f32 %v472_v22, %v150_v24  ;;  %v270_v24 = vrot.slane %v269_v8, 2 }
  0x9d   :  { %v166_v33 = vadd.f32 %v158_v30, %v90_v26 }
  0x9e   :  { %v168_v35 = vadd.f32 %v160_v32, %v92_v31  ;;  %v133_v37 = vpop.permute.xlu1 %132 }
  0x9f   :  { %v362_v38 = vpop.eup %361  ;;  %v174_v42 = vadd.f32 1.0, %v166_v33  ;;  %v143_v43 = vsub.f32 %v133_v37, %v455_v14  ;;  %v271_v37 = vadd.f32 %v270_v24, %v269_v8 }
  0xa0   :  { %v364_v15 = vpop.eup %363  ;;  %v176_v41 = vadd.f32 1.0, %v168_v35  ;;  %v188_v44 = vmul.f32 %v362_v38, %v172_v12  ;;  %v216_v49 = vpop.permute.xlu0 %215  ;;  %v280_v12 = vrot.slane %v247_v2, 4 }
  0xa1   :  { %365 = vrcp.f32 %v174_v42  ;;  %v151_v45 = vand.u32 2147483647, %v143_v43  ;;  %v187_v46 = vmul.f32 %v364_v15, %v171_v18 }
  0xa2   :  { %367 = vrcp.f32 %v176_v41  ;;  %v196_v50 = vsub.f32 2.0, %v188_v44  ;;  %v281_v28 = vadd.f32 %v280_v12, %v247_v2 }
  0xa3   :  { %v161_v53 = vmul.f32 %v472_v22, %v151_v45  ;;  %v195_v54 = vsub.f32 2.0, %v187_v46  ;;  %v252_v22 = vrot.slane %v251_v57, 2  ;;  %v272_v45 = vrot.slane %v271_v37, 1 }
  0xa4   :  { %v204_v59 = vmul.f32 %v362_v38, %v196_v50  ;;  %v282_v40 = vrot.slane %v281_v28, 2 }
  0xa5   :  { %v169_v56 = vadd.f32 %v161_v53, %v93_v51  ;;  %v203_v14 = vmul.f32 %v364_v15, %v195_v54  ;;  %v253_v18 = vadd.f32 %v252_v22, %v251_v57 }
  0xa7   :  { %v366_v60 = vpop.eup %365  ;;  %v177_v62 = vadd.f32 1.0, %v169_v56  ;;  %v243_v63 = vmul.f32 %v216_v49, %v203_v14  ;;  %v220_v0 = vpop.permute.xlu1 %219  ;;  %v254_v34 = vrot.slane %v253_v18, 1  ;;  %v283_v49 = vadd.f32 %v282_v40, %v281_v28 }
  0xa8   :  { %v368_v1 = vpop.eup %367  ;;  %v244_v3 = vmul.f32 %v220_v0, %v204_v59  ;;  %v190_v4 = vmul.f32 %v366_v60, %v174_v42  ;;  %v236_v11 = vpop.permute.xlu0 %235  ;;  %v273_v14 = vadd.f32 %v272_v45, %v271_v37 }
  0xa9   :  { %369 = vrcp.f32 %v177_v62  ;;  %v256_v21 = vrot.slane %v243_v63, 4  ;;  %v192_v5 = vmul.f32 %v368_v1, %v176_v41  ;;  %v255_v15 = vadd.f32 %v254_v34, %v253_v18 }
  0xaa   :  { %v262_v6 = vrot.slane %v244_v3, 4  ;;  %v198_v7 = vsub.f32 2.0, %v190_v4  ;;  %v284_v57 = vrot.slane %v283_v49, 1 }
  0xab   :  { %v257_v9 = vadd.f32 %v256_v21, %v243_v63  ;;  %v200_v10 = vsub.f32 2.0, %v192_v5 }
  0xac   :  { %v263_v13 = vadd.f32 %v262_v6, %v244_v3  ;;  %v206_v20 = vmul.f32 %v366_v60, %v198_v7  ;;  %v285_v0 = vadd.f32 %v284_v57, %v283_v49 }
  0xad   :  { %v258_v16 = vrot.slane %v257_v9, 2  ;;  %v208_v17 = vmul.f32 %v368_v1, %v200_v10 }
  0xae   :  { %v264_v19 = vrot.slane %v263_v13, 2 }
  0xaf   :  { %v370_v23 = vpop.eup %369  ;;  %v259_v25 = vadd.f32 %v258_v16, %v257_v9  ;;  %v248_v26 = vmul.f32 %v236_v11, %v208_v17  ;;  %v228_v27 = vpop.permute.xlu1 %227 }
  0xb0   :  { %v265_v29 = vadd.f32 %v264_v19, %v263_v13  ;;  %v246_v30 = vmul.f32 %v228_v27, %v206_v20  ;;  %v193_v31 = vmul.f32 %v370_v23, %v177_v62 }
  0xb1   :  { %v260_v32 = vrot.slane %v259_v25, 1  ;;  %v286_v33 = vrot.slane %v248_v26, 4 }
  0xb2   :  { %v274_v35 = vrot.slane %v246_v30, 4  ;;  %v201_v36 = vsub.f32 2.0, %v193_v31  ;;  %v266_v38 = vrot.slane %v265_v29, 1 }
  0xb3   :  { %v287_v39 = vadd.f32 %v286_v33, %v248_v26  ;;  %v261_v42 = vadd.f32 %v260_v32, %v259_v25 }
  0xb4   :  { %v275_v43 = vadd.f32 %v274_v35, %v246_v30  ;;  %v209_v44 = vmul.f32 %v370_v23, %v201_v36  ;;  %v267_v46 = vadd.f32 %v266_v38, %v265_v29 }
  0xb5   :  { %v288_v47 = vrot.slane %v287_v39, 2  ;;  %v307_v50 = vsel %vm306_vm0, %v261_v42, %v255_v15 }
  0xb6   :  { %v276_v41 = vrot.slane %v275_v43, 2  ;;  %v309_v55 = vsel %vm308_vm1, %v267_v46, %v307_v50 }
  0xb7   :  { %v240_v48 = vpop.permute.xlu1 %239  ;;  %v289_v56 = vadd.f32 %v288_v47, %v287_v39  ;;  %v311_v61 = vsel %vm310_vm2, %v273_v14, %v309_v55 }
  0xb8   :  { %v277_v51 = vadd.f32 %v276_v41, %v275_v43  ;;  %v249_v52 = vmul.f32 %v240_v48, %v209_v44 }
  0xb9   :  { %v290_v62 = vrot.slane %v289_v56, 1 }
  0xba   :  { %v278_v53 = vrot.slane %v277_v51, 1  ;;  %v292_v54 = vrot.slane %v249_v52, 4 }
  0xbb   :  { %v291_v4 = vadd.f32 %v290_v62, %v289_v56 }
  0xbc   :  { %v279_v58 = vadd.f32 %v278_v53, %v277_v51  ;;  %v293_v59 = vadd.f32 %v292_v54, %v249_v52 }
  0xbe   :  { %v294_v60 = vrot.slane %v293_v59, 2  ;;  %v313_v63 = vsel %vm312_vm3, %v279_v58, %v311_v61 }
  0xbf   :  { %v315_v3 = vsel %vm314_vm4, %v285_v0, %v313_v63 }
  0xc0   :  { %v295_v1 = vadd.f32 %v294_v60, %v293_v59  ;;  %v317_v5 = vsel %vm316_vm5, %v291_v4, %v315_v3 }
  0xc2   :  { %v296_v2 = vrot.slane %v295_v1, 1 }
  0xc4   :  { %v297_v21 = vadd.f32 %v296_v2, %v295_v1 }
  0xc6   :  { %v319_v22 = vsel %vm318_vm6, %v297_v21, %v317_v5 }
  0xc7   :  { %321 = vst [vmem:[#allocation2] sm:$0xff] %v319_v22 }
  0xc8   :  { %332 = dma.vmem_to_hbm [thread:$0]  %s328_s2, 128, %s330_s13, [#allocation3]  }
  0xc9   :  { %395 = dma.done.wait [#allocation3], 128  }
  0xca   :  { %396 = vsyncadd [#allocation3], 4294967168 }
  0xcb   :  { %337 = vsyncpa [#allocation3], 1 }

</bundles_post_ra>
